<compile_context>
chip_gen: v6e
topology: v6e:2x2x1
jax: 0.10.0
libtpu: 0.0.40
codegen_flags: <defaults>
</compile_context>

<pallas_src>
import jax
import jax.numpy as jnp
from jax.experimental import pallas as pl
from jax.experimental.pallas import tpu as pltpu

BN_EPS = 1e-5


# ----------------------------- the Pallas kernel -----------------------------

def classifier_kernel(x_ref, w1_ref, b1_ref, w2_ref, b2_ref, w3_ref, b3_ref,
                      o_ref):
    x = x_ref[...]                                                   # (Bt, 64)

    # Stage 1: Linear(64,15) with BN folded in, then ReLU.
    h = jnp.dot(x, w1_ref[...], preferred_element_type=jnp.float32) + b1_ref[...]
    h = jnp.maximum(h, 0.0)

    # Stage 2: Linear(15,10) with BN folded in, then ReLU.
    h = jnp.dot(h, w2_ref[...], preferred_element_type=jnp.float32) + b2_ref[...]
    h = jnp.maximum(h, 0.0)

    # Stage 3: Linear(10,10) with BN folded in, then softmax over dim=1.
    z = jnp.dot(h, w3_ref[...], preferred_element_type=jnp.float32) + b3_ref[...]
    z = z - jnp.max(z, axis=-1, keepdims=True)
    e = jnp.exp(z)
    o_ref[...] = e / jnp.sum(e, axis=-1, keepdims=True)


def classifier_forward(encoded, kernel_params):
    """encoded: (B, 64) float32.  Returns (B, 10) softmax probabilities."""
    w1, b1, w2, b2, w3, b3 = kernel_params
    B, D = encoded.shape
    out_dim = w3.shape[1]

    # Batch tile: fill the MXU M dimension (<=128 rows), keep the second-to-last
    # block dim a multiple of 8 by padding the batch.
    if B >= 128:
        bt = 128
    else:
        bt = max(8, ((B + 7) // 8) * 8)
    Bp = ((B + bt - 1) // bt) * bt
    if Bp != B:
        encoded = jnp.pad(encoded, ((0, Bp - B), (0, 0)))

    out = pl.pallas_call(
        classifier_kernel,
        out_shape=jax.ShapeDtypeStruct((Bp, out_dim), jnp.float32),
        grid=(Bp // bt,),
        in_specs=[
            pl.BlockSpec((bt, D), lambda i: (i, 0)),     # per-tile batch slice
            pl.BlockSpec(w1.shape, lambda i: (0, 0)),    # resident weights/biases
            pl.BlockSpec(b1.shape, lambda i: (0, 0)),
            pl.BlockSpec(w2.shape, lambda i: (0, 0)),
            pl.BlockSpec(b2.shape, lambda i: (0, 0)),
            pl.BlockSpec(w3.shape, lambda i: (0, 0)),
            pl.BlockSpec(b3.shape, lambda i: (0, 0)),
        ],
        out_specs=pl.BlockSpec((bt, out_dim), lambda i: (i, 0)),
        compiler_params=pltpu.CompilerParams(
            dimension_semantics=("parallel",)),
    )(encoded, w1, b1, w2, b2, w3, b3)
    return out[:B]


# ----------------------------- parameter setup (glue) ------------------------

def fold_linear_bn(w, b, gamma, beta, mean, var):
    """Fold eval-mode BatchNorm1d into a Linear layer.

    w: (out, in) torch Linear weight; returns (in, out) kernel weight and (1, out) bias.
    """
    scale = gamma / jnp.sqrt(var + BN_EPS)                 # (out,)
    w_fold = w.T * scale[None, :]                          # (in, out)
    b_fold = (b - mean) * scale + beta                     # (out,)
    return w_fold, b_fold.reshape(1, -1)


def init_params(key):
    """Deterministic synthetic parameters in PyTorch layout + folded kernel layout."""
    dims = [(64, 15), (15, 10), (10, 10)]
    keys = jax.random.split(key, len(dims) * 6)
    pt_params = []
    kernel_args = []
    ki = 0
    for (din, dout) in dims:
        kw, kb, kg, kbe, km, kv = keys[ki:ki + 6]
        ki += 6
        w = jax.random.normal(kw, (dout, din), jnp.float32) / jnp.sqrt(din)
        b = 0.1 * jax.random.normal(kb, (dout,), jnp.float32)
        gamma = 1.0 + 0.1 * jax.random.normal(kg, (dout,), jnp.float32)
        beta = 0.1 * jax.random.normal(kbe, (dout,), jnp.float32)
        mean = 0.1 * jax.random.normal(km, (dout,), jnp.float32)
        var = 1.0 + 0.1 * jax.random.uniform(kv, (dout,), jnp.float32)
        pt_params.append((w, b, gamma, beta, mean, var))
        wf, bf = fold_linear_bn(w, b, gamma, beta, mean, var)
        kernel_args.extend([wf, bf])
    return pt_params, tuple(kernel_args)


# ----------------------------- pure-JAX reference (mirrors PyTorch) ----------

def reference_forward(encoded, pt_params):
    h = encoded
    for i, (w, b, gamma, beta, mean, var) in enumerate(pt_params):
        h = h @ w.T + b
        h = (h - mean) / jnp.sqrt(var + BN_EPS) * gamma + beta
        if i < 2:
            h = jnp.maximum(h, 0.0)
    return jax.nn.softmax(h, axis=1)


# ----------------------------- main -----------------------------------------

if __name__ == "__main__":
    B = 16
    key = jax.random.PRNGKey(0)
    kx, kaux, kp = jax.random.split(key, 3)

    encoded = jax.random.normal(kx, (B, 64), jnp.float32)
    aux = jax.random.normal(kaux, (B, 7), jnp.float32)    # x[1], unused by forward
    x = (encoded, aux)

    pt_params, kernel_params = init_params(kp)

    enc, _ = (x[0], x[1])                                 # mirrors the PyTorch forward
    out = classifier_forward(enc, kernel_params)
    out = jax.block_until_ready(out)

    ref = reference_forward(encoded, pt_params)
    assert out.shape == (B, 10), out.shape
    assert jnp.allclose(jnp.sum(out, axis=1), 1.0, atol=1e-4), "rows must sum to 1"
    assert jnp.allclose(out, ref, atol=1e-4, rtol=1e-4), (out, ref)
    print("KERNEL_OK")
</pallas_src>

<mosaic_0001>
module attributes {stable_mosaic.version = 11 : i64} {
  func.func @classifier_kernel(%arg0: i32, %arg1: memref<16x64xf32, #tpu.memory_space<vmem>>, %arg2: memref<64x15xf32, #tpu.memory_space<vmem>>, %arg3: memref<1x15xf32, #tpu.memory_space<vmem>>, %arg4: memref<15x10xf32, #tpu.memory_space<vmem>>, %arg5: memref<1x10xf32, #tpu.memory_space<vmem>>, %arg6: memref<10x10xf32, #tpu.memory_space<vmem>>, %arg7: memref<1x10xf32, #tpu.memory_space<vmem>>, %arg8: memref<16x10xf32, #tpu.memory_space<vmem>>) attributes {dimension_semantics = [#tpu.dimension_semantics<parallel>], iteration_bounds = array<i64: 1>, scalar_prefetch = 0 : i64, scratch_operands = 0 : i64, tpu.core_type = #tpu.core_type<tc>, window_params = [{transform_indices = @transform_0, window_bounds = array<i64: 16, 64>}, {pipeline_mode = #tpu.pipeline_mode<synchronous>, transform_indices = @transform_1, window_bounds = array<i64: 64, 15>}, {pipeline_mode = #tpu.pipeline_mode<synchronous>, transform_indices = @transform_2, window_bounds = array<i64: 1, 15>}, {pipeline_mode = #tpu.pipeline_mode<synchronous>, transform_indices = @transform_3, window_bounds = array<i64: 15, 10>}, {pipeline_mode = #tpu.pipeline_mode<synchronous>, transform_indices = @transform_4, window_bounds = array<i64: 1, 10>}, {pipeline_mode = #tpu.pipeline_mode<synchronous>, transform_indices = @transform_5, window_bounds = array<i64: 10, 10>}, {pipeline_mode = #tpu.pipeline_mode<synchronous>, transform_indices = @transform_6, window_bounds = array<i64: 1, 10>}, {transform_indices = @transform_7, window_bounds = array<i64: 16, 10>}]} {
    %c0 = arith.constant 0 : index
    %c0_0 = arith.constant 0 : index
    %0 = vector.load %arg1[%c0, %c0_0] : memref<16x64xf32, #tpu.memory_space<vmem>>, vector<16x64xf32>
    %c0_1 = arith.constant 0 : index
    %c0_2 = arith.constant 0 : index
    %1 = vector.load %arg2[%c0_1, %c0_2] : memref<64x15xf32, #tpu.memory_space<vmem>>, vector<64x15xf32>
    %cst = arith.constant dense<0.000000e+00> : vector<16x15xf32>
    %2 = tpu.matmul %0, %1, %cst {dimension_numbers = #tpu.dot_dimension_numbers<[1], [0], [0], [1], [0, 0, 1, 1], [], []>} : vector<16x64xf32>, vector<64x15xf32>, vector<16x15xf32> -> vector<16x15xf32>
    %c0_3 = arith.constant 0 : index
    %c0_4 = arith.constant 0 : index
    %3 = vector.load %arg3[%c0_3, %c0_4] : memref<1x15xf32, #tpu.memory_space<vmem>>, vector<1x15xf32>
    %4 = vector.broadcast %3 : vector<1x15xf32> to vector<16x15xf32>
    %5 = arith.addf %2, %4 : vector<16x15xf32>
    %cst_5 = arith.constant 0.000000e+00 : f32
    %6 = vector.broadcast %cst_5 : f32 to vector<16x15xf32>
    %7 = arith.maximumf %5, %6 : vector<16x15xf32>
    %c0_6 = arith.constant 0 : index
    %c0_7 = arith.constant 0 : index
    %8 = vector.load %arg4[%c0_6, %c0_7] : memref<15x10xf32, #tpu.memory_space<vmem>>, vector<15x10xf32>
    %cst_8 = arith.constant dense<0.000000e+00> : vector<16x10xf32>
    %9 = tpu.matmul %7, %8, %cst_8 {dimension_numbers = #tpu.dot_dimension_numbers<[1], [0], [0], [1], [0, 0, 1, 1], [], []>} : vector<16x15xf32>, vector<15x10xf32>, vector<16x10xf32> -> vector<16x10xf32>
    %c0_9 = arith.constant 0 : index
    %c0_10 = arith.constant 0 : index
    %10 = vector.load %arg5[%c0_9, %c0_10] : memref<1x10xf32, #tpu.memory_space<vmem>>, vector<1x10xf32>
    %11 = vector.broadcast %10 : vector<1x10xf32> to vector<16x10xf32>
    %12 = arith.addf %9, %11 : vector<16x10xf32>
    %cst_11 = arith.constant 0.000000e+00 : f32
    %13 = vector.broadcast %cst_11 : f32 to vector<16x10xf32>
    %14 = arith.maximumf %12, %13 : vector<16x10xf32>
    %c0_12 = arith.constant 0 : index
    %c0_13 = arith.constant 0 : index
    %15 = vector.load %arg6[%c0_12, %c0_13] : memref<10x10xf32, #tpu.memory_space<vmem>>, vector<10x10xf32>
    %cst_14 = arith.constant dense<0.000000e+00> : vector<16x10xf32>
    %16 = tpu.matmul %14, %15, %cst_14 {dimension_numbers = #tpu.dot_dimension_numbers<[1], [0], [0], [1], [0, 0, 1, 1], [], []>} : vector<16x10xf32>, vector<10x10xf32>, vector<16x10xf32> -> vector<16x10xf32>
    %c0_15 = arith.constant 0 : index
    %c0_16 = arith.constant 0 : index
    %17 = vector.load %arg7[%c0_15, %c0_16] : memref<1x10xf32, #tpu.memory_space<vmem>>, vector<1x10xf32>
    %18 = vector.broadcast %17 : vector<1x10xf32> to vector<16x10xf32>
    %19 = arith.addf %16, %18 : vector<16x10xf32>
    %cst_17 = arith.constant dense<0xFF800000> : vector<16xf32>
    %20 = vector.multi_reduction <maximumf>, %19, %cst_17 [1] : vector<16x10xf32> to vector<16xf32>
    %21 = vector.shape_cast %20 : vector<16xf32> to vector<16x1xf32>
    %22 = vector.broadcast %21 : vector<16x1xf32> to vector<16x10xf32>
    %23 = arith.subf %19, %22 : vector<16x10xf32>
    %24 = math.exp %23 : vector<16x10xf32>
    %cst_18 = arith.constant dense<0.000000e+00> : vector<16xf32>
    %25 = vector.multi_reduction <add>, %24, %cst_18 [1] : vector<16x10xf32> to vector<16xf32>
    %26 = vector.shape_cast %25 : vector<16xf32> to vector<16x1xf32>
    %27 = vector.broadcast %26 : vector<16x1xf32> to vector<16x10xf32>
    %28 = arith.divf %24, %27 : vector<16x10xf32>
    %c0_19 = arith.constant 0 : index
    %c0_20 = arith.constant 0 : index
    %29 = vector.load %arg8[%c0_19, %c0_20] : memref<16x10xf32, #tpu.memory_space<vmem>>, vector<16x10xf32>
    tpu.vector_store %arg8[%c0_19, %c0_20], %28 {strides = array<i32>} : memref<16x10xf32, #tpu.memory_space<vmem>>, vector<16x10xf32>,
    return
  }
  func.func @transform_0(%arg0: i32) -> (i32, i32) {
    %c0_i32 = arith.constant 0 : i32
    %c0_i32_0 = arith.constant 0 : i32
    return %arg0, %c0_i32 : i32, i32
  }
  func.func @transform_1(%arg0: i32) -> (i32, i32) {
    %c0_i32 = arith.constant 0 : i32
    %c0_i32_0 = arith.constant 0 : i32
    %c0_i32_1 = arith.constant 0 : i32
    return %c0_i32, %c0_i32_0 : i32, i32
  }
  func.func @transform_2(%arg0: i32) -> (i32, i32) {
    %c0_i32 = arith.constant 0 : i32
    %c0_i32_0 = arith.constant 0 : i32
    %c0_i32_1 = arith.constant 0 : i32
    return %c0_i32, %c0_i32_0 : i32, i32
  }
  func.func @transform_3(%arg0: i32) -> (i32, i32) {
    %c0_i32 = arith.constant 0 : i32
    %c0_i32_0 = arith.constant 0 : i32
    %c0_i32_1 = arith.constant 0 : i32
    return %c0_i32, %c0_i32_0 : i32, i32
  }
  func.func @transform_4(%arg0: i32) -> (i32, i32) {
    %c0_i32 = arith.constant 0 : i32
    %c0_i32_0 = arith.constant 0 : i32
    %c0_i32_1 = arith.constant 0 : i32
    return %c0_i32, %c0_i32_0 : i32, i32
  }
  func.func @transform_5(%arg0: i32) -> (i32, i32) {
    %c0_i32 = arith.constant 0 : i32
    %c0_i32_0 = arith.constant 0 : i32
    %c0_i32_1 = arith.constant 0 : i32
    return %c0_i32, %c0_i32_0 : i32, i32
  }
  func.func @transform_6(%arg0: i32) -> (i32, i32) {
    %c0_i32 = arith.constant 0 : i32
    %c0_i32_0 = arith.constant 0 : i32
    %c0_i32_1 = arith.constant 0 : i32
    return %c0_i32, %c0_i32_0 : i32, i32
  }
  func.func @transform_7(%arg0: i32) -> (i32, i32) {
    %c0_i32 = arith.constant 0 : i32
    %c0_i32_0 = arith.constant 0 : i32
    return %arg0, %c0_i32 : i32, i32
  }
}

</mosaic_0001>

<bundles_post_ra>
// kernel: tpu_custom_call.1
= control target key start
LH: loop header
LB: loop body
LE: loop exit
PB: predicated region body
PF: predicated region fallthrough
CT: control target
= control target key end

     0   :  { %vm44_vm0 = vcmask 523264   ;;  %s562_s0 = inlined_call_operand.vmem [shape: f32[16,64], index: 0, kind: input, shape index: {}]   ;;  %s563_s1 = inlined_call_operand.vmem [shape: f32[64,15], index: 1, kind: input, shape index: {}]   ;;  %s564_s2 = inlined_call_operand.vmem [shape: f32[1,15], index: 2, kind: input, shape index: {}]   ;;  %s565_s3 = inlined_call_operand.vmem [shape: f32[15,10], index: 3, kind: input, shape index: {}]   ;;  %s566_s4 = inlined_call_operand.vmem [shape: f32[1,10], index: 4, kind: input, shape index: {}]   ;;  %s567_s5 = inlined_call_operand.vmem [shape: f32[10,10], index: 5, kind: input, shape index: {}]   ;;  %s568_s6 = inlined_call_operand.vmem [shape: f32[1,10], index: 6, kind: input, shape index: {}]   ;;  %s569_s7 = inlined_call_operand.hbm [shape: f32[16,10], index: 7, kind: output, shape index: {}]  }
   0x1   :  { %v36_v0 = vld [vmem:[%s563_s1 + $0x38] sm:$0xff]  ;;  %v35_v1 = vld [vmem:[%s563_s1 + $0x30] sm:$0xff]  ;;  %v34_v2 = vld [vmem:[%s563_s1 + $0x28] sm:$0xff] }
   0x2   :  { %389 = vmatprep.subr.mxu0 %v36_v0  ;;  %v27_v3 = vld [vmem:[%s562_s0] sm:$0xff] }
   0x3   :  { %390 = vmatpush3.msra.mxu0 %v36_v0  ;;  %405 = vmatprep.mubr.msk.f32.mxu0 %vm44_vm0, %v27_v3 }
   0x4   :  { %391 = vmatprep.subr.mxu0 %v35_v1 }
   0x5   :  { %12 = vsyncpa [#allocation3], 0  ;;  %392 = vmatpush3.msra.mxu0 %v35_v1  ;;  %v33_v4 = vld [vmem:[%s563_s1 + $0x20] sm:$0xff]  ;;  %v32_v5 = vld [vmem:[%s563_s1 + $0x18] sm:$0xff]  ;;  %vm144_vm1 = vcmask 1046528   ;;  %vm137_vm2 = vcmask 121856  }
   0x6   :  { %393 = vmatprep.subr.mxu0 %v34_v2  ;;  %v31_v6 = vld [vmem:[%s563_s1 + $0x10] sm:$0xff]  ;;  %v30_v7 = vld [vmem:[%s563_s1 + $0x8] sm:$0xff]  ;;  %v29_v8 = vld [vmem:[%s563_s1] sm:$0xff]  ;;  %vm241_vm3 = vcmask 1041408   ;;  %vm234_vm4 = vcmask 80896  }
   0x7   :  { %394 = vmatpush3.msra.mxu0 %v34_v2  ;;  %v28_v9 = vld [vmem:[%s562_s0 + $0x8] sm:$0xff]  ;;  %v128_v11 = vld [vmem:[%s565_s3] sm:$0xff] }
   0x8   :  { %395 = vmatprep.subr.mxu0 %v33_v4  ;;  %v129_v10 = vld [vmem:[%s565_s3 + $0x8] sm:$0x7f]  ;;  %v360_v12 = vld [vmem:[%s564_s2] ss:$0 sm:$0xff] }
   0x9   :  { %396 = vmatpush3.msra.mxu0 %v33_v4  ;;  %408 = vmatprep.subr.msk.mxu1 %vm144_vm1, %v129_v10  ;;  %v226_v19 = vld [vmem:[%s567_s5 + $0x8] sm:$0x3]  ;;  %v225_v20 = vld [vmem:[%s567_s5] sm:$0xff] }
   0xa   :  { %397 = vmatprep.subr.mxu0 %v32_v5  ;;  %409 = vmatpush3.msk.msra.mxu1 %vm144_vm1, %v129_v10  ;;  %v363_v21 = vld [vmem:[%s566_s4] ss:$0 sm:$0xff]  ;;  %s455_s4 = smov [#allocation2]  }
   0xb   :  { %398 = vmatpush3.msra.mxu0 %v32_v5  ;;  %410 = vmatprep.subr.mxu1 %v128_v11  ;;  %v367_v29 = vld [vmem:[%s568_s6] ss:$0 sm:$0xff]  ;;  %s349_s6 = sshll.u32 %s455_s4, 4  ;;  %s350_s6 = int_to_ptr.vmem [resolvable:$true] %s349_s6 }
   0xc   :  { %399 = vmatprep.subr.mxu0 %v31_v6  ;;  %411 = vmatpush3.msra.mxu1 %v128_v11  ;;  %s433_s30 = scalar_lea.vmem %s350_s6, 256  ;;  %p438_p1 = scmp.lt.s32.totalorder %s350_s6, %s350_s6 }
   0xd   :  { %400 = vmatpush3.msra.mxu0 %v31_v6  ;;  %415 = vmatprep.subr.msk.mxu1 %vm241_vm3, %v226_v19  ;;  %p434_p0 = scmp.ne.s32.totalorder %s350_s6, %s433_s30  ;;  %p439_p2 = scmp.lt.s32.totalorder %s433_s30, %s433_s30 }
   0xe   :  { %401 = vmatprep.subr.mxu0 %v30_v7 }
   0xf   :  { %402 = vmatpush3.msra.mxu0 %v30_v7  ;;  %p440_p3 = por %p439_p2, %p438_p1 }
  0x10   :  { %403 = vmatprep.subr.mxu0 %v29_v8 }
  0x11   :  { %404 = vmatpush3.msra.mxu0 %v29_v8  ;;  %p441_p4 = pnand %p440_p3, %p434_p0 }
  0x12   :  { %406 = vmatmul.mubr.msk.f32.vlgmr.msra.gmra.mxu0 %vm44_vm0, %v28_v9 }
  0xd2   :  { %v407_v13 = vpop.f32.mrf.mxu0 }
  0xd3   :  { %v123_v14 = vadd.f32 %v407_v13, %v360_v12 }
  0xd4   :  { %v117_v15 = vpop.f32.mrf.mxu0 }
  0xd5   :  { %v118_v16 = vadd.f32 %v360_v12, %v117_v15  ;;  %v127_v18 = vmax.f32 %v123_v14, 0.0 }
  0xd7   :  { %v126_v17 = vmax.f32 %v118_v16, 0.0 }
  0xd9   :  { %412 = vmatprep.mubr.msk.f32.mxu1 %vm137_vm2, %v126_v17 }
  0xda   :  { %413 = vmatmul.mubr.msk.f32.vlgmr.msra.gmra.mxu1 %vm137_vm2, %v127_v18 }
  0xdb   :  { %416 = vmatpush3.msk.msra.mxu1 %vm241_vm3, %v226_v19 }
  0xdc   :  { %417 = vmatprep.subr.mxu1 %v225_v20 }
  0xdd   :  { %418 = vmatpush3.msra.mxu1 %v225_v20 }
 0x19a   :  { %v414_v22 = vpop.f32.mrf.mxu1 }
 0x19b   :  { %v220_v23 = vadd.f32 %v414_v22, %v363_v21 }
 0x19c   :  { %v214_v24 = vpop.f32.mrf.mxu1 }
 0x19d   :  { %v215_v25 = vadd.f32 %v363_v21, %v214_v24  ;;  %v224_v27 = vmax.f32 %v220_v23, 0.0 }
 0x19f   :  { %v223_v26 = vmax.f32 %v215_v25, 0.0 }
 0x1a1   :  { %419 = vmatprep.mubr.msk.f32.mxu1 %vm234_vm4, %v223_v26 }
 0x1a2   :  { %420 = vmatmul.mubr.msk.f32.vlgmr.msra.gmra.mxu1 %vm234_vm4, %v224_v27 }
 0x262   :  { %v421_v28 = vpop.f32.mrf.mxu1 }
 0x263   :  { %v317_v32 = vadd.f32 %v421_v28, %v367_v29 }
 0x264   :  { %v311_v30 = vpop.f32.mrf.mxu1 }
 0x265   :  { %v312_v31 = vadd.f32 %v367_v29, %v311_v30  ;;  %v323_v34 = vsel %vm234_vm4, %v317_v32, -inf }
 0x267   :  { %v320_v33 = vsel %vm234_vm4, %v312_v31, -inf }
 0x268   :  { %321 = vmax.xlane.f32.xlu0 %v320_v33 }
 0x26c   :  { %324 = vmax.xlane.f32.xlu0 %v323_v34 }
 0x2f1   :  { %v322_v35 = vpop.xlane.xlu0 %321 }
 0x2f2   :  { %v326_v36 = vsub.f32 %v312_v31, %v322_v35 }
 0x2f4   :  { %v328_v37 = vmul.f32 1.442695, %v326_v36 }
 0x2f5   :  { %v325_v38 = vpop.xlane.xlu0 %324 }
 0x2f6   :  { %425 = vpow2.f32 %v328_v37  ;;  %v327_v39 = vsub.f32 %v317_v32, %v325_v38 }
 0x2f8   :  { %v330_v40 = vmul.f32 1.442695, %v327_v39 }
 0x2fa   :  { %427 = vpow2.f32 %v330_v40 }
 0x303   :  { %v426_v41 = vpop.eup %425 }
 0x304   :  { %v332_v42 = vsel %vm234_vm4, %v426_v41, 0.0 }
 0x305   :  { %333 = vadd.xlane.f32.xlu1 %v332_v42 }
 0x307   :  { %v428_v43 = vpop.eup %427 }
 0x308   :  { %v335_v44 = vsel %vm234_vm4, %v428_v43, 0.0 }
 0x309   :  { %336 = vadd.xlane.f32.xlu1 %v335_v44 }
 0x38e   :  { %v334_v45 = vpop.xlane.xlu1 %333 }
 0x38f   :  { %429 = vrcp.f32 %v334_v45 }
 0x392   :  { %v337_v46 = vpop.xlane.xlu1 %336 }
 0x393   :  { %431 = vrcp.f32 %v337_v46 }
 0x39c   :  { %v430_v47 = vpop.eup %429 }
 0x39d   :  { %v339_v48 = vmul.f32 %v430_v47, %v426_v41 }
 0x39f   :  { %342 = vst.msk [vmem:[#allocation2] sm:$0xff] %vm234_vm4, %v339_v48 }
 0x3a0   :  { %v432_v49 = vpop.eup %431 }
 0x3a1   :  { %v341_v50 = vmul.f32 %v432_v49, %v428_v43 }
 0x3a3   :  { %343 = vst.msk [vmem:[#allocation2 + $0x8] sm:$0xff] %vm234_vm4, %v341_v50 }
 0x3a4   :  { %444 = shalt.err (!%p441_p4)
}
 0x3a5   :  { %s456_s8 = smov 128   ;;  %s457_s9 = smov 8  }
 0x3a6   :  { %355 = dma.vmem_to_hbm [thread:$0]  %s350_s6, 256, %s569_s7, [#allocation3], %s456_s8, %s456_s8, %s457_s9  }
 0x3a7   :  { %453 = dma.done.wait [#allocation3], 256  }
 0x3a8   :  { %454 = vsyncadd [#allocation3], 4294967040 }
 0x3a9   :  { %359 = vsyncpa [#allocation3], 1 }

</bundles_post_ra>
